<compile_context>
chip_gen: v6e
topology: v6e:2x2x1
jax: 0.10.0
libtpu: 0.0.40
codegen_flags: <defaults>
</compile_context>

<pallas_src>
import math
import jax
import jax.numpy as jnp
from jax.experimental import pallas as pl
from jax.experimental.pallas import tpu as pltpu


def _make_kernel(e_blk: int, shared_x: bool):
    """Kernel processing `e_blk` ensemble members per grid step."""

    def kernel(x_ref, w_in_ref, b_in_ref,
               w1_ref, b1_ref, w2_ref, b2_ref,
               g_ref, beta_ref,
               wh_ref, bh_ref,
               out_ref):
        cdt = w_in_ref.dtype           # matmul compute dtype (f32 or bf16)
        gamma = g_ref[...]             # [1, H], f32 (hoisted out of e-loop)
        beta = beta_ref[...]           # [1, H], f32

        if shared_x:
            x_shared = x_ref[...].astype(cdt)   # [B, S], cast once, reused E times

        # Small static unroll over the ensemble members of this block.
        for e in range(e_blk):
            x = x_shared if shared_x else x_ref[e].astype(cdt)   # [B, S]

            # input layer: x @ W_in + b_in  (f32 accumulation)
            h = jnp.dot(x, w_in_ref[e],
                        preferred_element_type=jnp.float32) + b_in_ref[e]   # [B, H] f32

            # residual MLP block
            residual = h
            h1 = jnp.maximum(
                jnp.dot(h.astype(cdt), w1_ref[e],
                        preferred_element_type=jnp.float32) + b1_ref[e], 0.0)
            h2 = jnp.maximum(
                jnp.dot(h1.astype(cdt), w2_ref[e],
                        preferred_element_type=jnp.float32) + b2_ref[e], 0.0)
            h = residual + h2                                                # [B, H] f32

            # LayerNorm over last dim (biased variance, eps=1e-5, affine) in f32
            mean = jnp.mean(h, axis=-1, keepdims=True)
            diff = h - mean
            var = jnp.mean(diff * diff, axis=-1, keepdims=True)
            hn = diff * jax.lax.rsqrt(var + 1e-5)
            hn = hn * gamma + beta                                           # [B, H]

            # all heads fused into one lane-dense matmul: [B, H] @ [H, NH*A]
            out_ref[e] = (
                jnp.dot(hn.astype(cdt), wh_ref[e],
                        preferred_element_type=jnp.float32) + bh_ref[e]
            ).astype(out_ref.dtype)

    return kernel


def ensemble_decoupled_q_forward(x, params, *, ensemble_size, num_heads,
                                 ensemble_block=None, weights_dtype=None):
    """x: [B, S] or [B, E, S]. Returns [B, E, NH, A] (matches PyTorch module).

    ensemble_block: members processed per grid step (must divide E).
        Default: 2 grid steps when possible (both v7x cores busy); set to E to
        fully collapse the grid on single-core v5e/v6e.
    weights_dtype: optional dtype (e.g. jnp.bfloat16) for the matmul weights.
    """
    w_in, b_in, w1, b1, w2, b2, gamma, beta, wh, bh = params
    E = ensemble_size
    NH = num_heads
    S = w_in.shape[1]
    H = w_in.shape[2]
    A = wh.shape[-1]
    NHA = NH * A

    if ensemble_block is None:
        ensemble_block = E // 2 if (E > 1 and E % 2 == 0) else E
    assert E % ensemble_block == 0, (E, ensemble_block)
    e_blk = ensemble_block
    grid = (E // e_blk,)

    # Fuse the head weights: [E, NH, H, A] -> [E, H, NH*A]; bias -> [E, 1, NH*A]
    wh_f = jnp.transpose(wh, (0, 2, 1, 3)).reshape(E, H, NHA)
    bh_f = jnp.transpose(bh, (0, 2, 1, 3)).reshape(E, 1, NHA)

    # Optional low-precision matmul weights (biases / LN params stay f32).
    if weights_dtype is not None:
        w_in_c = w_in.astype(weights_dtype)
        w1_c = w1.astype(weights_dtype)
        w2_c = w2.astype(weights_dtype)
        wh_c = wh_f.astype(weights_dtype)
    else:
        w_in_c, w1_c, w2_c, wh_c = w_in, w1, w2, wh_f

    gamma2 = gamma.reshape(1, H).astype(jnp.float32)
    beta2 = beta.reshape(1, H).astype(jnp.float32)

    if x.ndim == 2:
        # Shared state: single [B, S] block, resident in VMEM across all steps.
        shared_x = True
        x_in = x
        B = x.shape[0]
        x_spec = pl.BlockSpec((B, S), lambda e: (0, 0))
    else:
        # Per-member state: [B, E, S] -> [E, B, S].
        shared_x = False
        x_in = jnp.transpose(x, (1, 0, 2))
        B = x_in.shape[1]
        x_spec = pl.BlockSpec((e_blk, B, S), lambda e: (e, 0, 0))

    kernel = _make_kernel(e_blk, shared_x)

    out_e = pl.pallas_call(
        kernel,
        out_shape=jax.ShapeDtypeStruct((E, B, NHA), jnp.float32),
        grid_spec=pltpu.PrefetchScalarGridSpec(
            num_scalar_prefetch=0,
            grid=grid,
            in_specs=[
                x_spec,                                                  # x
                pl.BlockSpec((e_blk, S, H), lambda e: (e, 0, 0)),        # w_in
                pl.BlockSpec((e_blk, 1, H), lambda e: (e, 0, 0)),        # b_in
                pl.BlockSpec((e_blk, H, H), lambda e: (e, 0, 0)),        # w1
                pl.BlockSpec((e_blk, 1, H), lambda e: (e, 0, 0)),        # b1
                pl.BlockSpec((e_blk, H, H), lambda e: (e, 0, 0)),        # w2
                pl.BlockSpec((e_blk, 1, H), lambda e: (e, 0, 0)),        # b2
                pl.BlockSpec((1, H), lambda e: (0, 0)),                  # gamma (resident)
                pl.BlockSpec((1, H), lambda e: (0, 0)),                  # beta  (resident)
                pl.BlockSpec((e_blk, H, NHA), lambda e: (e, 0, 0)),      # fused head W
                pl.BlockSpec((e_blk, 1, NHA), lambda e: (e, 0, 0)),      # fused head b
            ],
            out_specs=pl.BlockSpec((e_blk, B, NHA), lambda e: (e, 0, 0)),
        ),
        compiler_params=pltpu.CompilerParams(
            dimension_semantics=("parallel",)),
    )(x_in, w_in_c, b_in, w1_c, b1, w2_c, b2, gamma2, beta2, wh_c, bh_f)

    # [E, B, NH*A] -> [E, B, NH, A] -> [B, E, NH, A]
    return jnp.transpose(out_e.reshape(E, B, NH, A), (1, 0, 2, 3))


def init_params(key, state_dim, hidden_dim, num_actions, num_heads, ensemble_size):
    ks = jax.random.split(key, 8)

    def u(k, shape, stdv):
        return jax.random.uniform(k, shape, jnp.float32, -stdv, stdv)

    stdv_in = 1.0 / math.sqrt(state_dim)
    stdv_h = 1.0 / math.sqrt(hidden_dim)

    w_in = u(ks[0], (ensemble_size, state_dim, hidden_dim), stdv_in)
    b_in = u(ks[1], (ensemble_size, 1, hidden_dim), stdv_in)
    w1 = u(ks[2], (ensemble_size, hidden_dim, hidden_dim), stdv_h)
    b1 = u(ks[3], (ensemble_size, 1, hidden_dim), stdv_h)
    w2 = u(ks[4], (ensemble_size, hidden_dim, hidden_dim), stdv_h)
    b2 = u(ks[5], (ensemble_size, 1, hidden_dim), stdv_h)
    gamma = jnp.ones((hidden_dim,), jnp.float32)   # nn.LayerNorm default
    beta = jnp.zeros((hidden_dim,), jnp.float32)
    wh = u(ks[6], (ensemble_size, num_heads, hidden_dim, num_actions), stdv_h)
    bh = u(ks[7], (ensemble_size, num_heads, 1, num_actions), stdv_h)
    return (w_in, b_in, w1, b1, w2, b2, gamma, beta, wh, bh)


def _reference_forward(x, params, ensemble_size, num_heads):
    """Pure-JAX reference mirroring the PyTorch module."""
    w_in, b_in, w1, b1, w2, b2, gamma, beta, wh, bh = params
    if x.ndim == 2:
        x = jnp.broadcast_to(x[:, None, :], (x.shape[0], ensemble_size, x.shape[1]))
    x = jnp.transpose(x, (1, 0, 2))                  # [E, B, S]
    h = x @ w_in + b_in
    res = h
    h1 = jax.nn.relu(h @ w1 + b1)
    h2 = jax.nn.relu(h1 @ w2 + b2)
    h = res + h2
    mean = jnp.mean(h, axis=-1, keepdims=True)
    var = jnp.mean((h - mean) ** 2, axis=-1, keepdims=True)
    h = (h - mean) / jnp.sqrt(var + 1e-5) * gamma + beta
    h = jnp.broadcast_to(h[:, None, :, :], (h.shape[0], num_heads, h.shape[1], h.shape[2]))
    out = h @ wh + bh                                 # [E, NH, B, A]
    return jnp.transpose(out, (2, 0, 1, 3))           # [B, E, NH, A]


if __name__ == "__main__":
    batch = 8
    state_dim = 16
    hidden_dim = 32
    num_actions = 4
    num_heads = 2
    ensemble_size = 4

    key = jax.random.PRNGKey(0)
    k_params, k_x = jax.random.split(key)
    params = init_params(k_params, state_dim, hidden_dim, num_actions,
                         num_heads, ensemble_size)
    x2d = jax.random.normal(k_x, (batch, state_dim), jnp.float32)          # 2D path
    x3d = jax.random.normal(k_x, (batch, ensemble_size, state_dim), jnp.float32)

    # --- f32, shared-x (2D) path, default grid (2 steps) ---
    out = jax.block_until_ready(ensemble_decoupled_q_forward(
        x2d, params, ensemble_size=ensemble_size, num_heads=num_heads))
    ref = _reference_forward(x2d, params, ensemble_size, num_heads)
    assert out.shape == (batch, ensemble_size, num_heads, num_actions), out.shape
    assert jnp.allclose(out, ref, atol=1e-5, rtol=1e-5), float(jnp.abs(out - ref).max())

    # --- f32, fully collapsed grid (v5e/v6e style, grid=(1,)) ---
    out_c = jax.block_until_ready(ensemble_decoupled_q_forward(
        x2d, params, ensemble_size=ensemble_size, num_heads=num_heads,
        ensemble_block=ensemble_size))
    assert jnp.allclose(out_c, ref, atol=1e-5, rtol=1e-5), float(jnp.abs(out_c - ref).max())

    # --- f32, per-member x (3D) path ---
    out3 = jax.block_until_ready(ensemble_decoupled_q_forward(
        x3d, params, ensemble_size=ensemble_size, num_heads=num_heads))
    ref3 = _reference_forward(x3d, params, ensemble_size, num_heads)
    assert jnp.allclose(out3, ref3, atol=1e-5, rtol=1e-5), float(jnp.abs(out3 - ref3).max())

    # --- bf16 matmul weights (f32 accumulation / LayerNorm), loose check ---
    out_bf16 = jax.block_until_ready(ensemble_decoupled_q_forward(
        x2d, params, ensemble_size=ensemble_size, num_heads=num_heads,
        weights_dtype=jnp.bfloat16))
    assert out_bf16.shape == (batch, ensemble_size, num_heads, num_actions)
    assert bool(jnp.all(jnp.isfinite(out_bf16)))
    assert jnp.allclose(out_bf16, ref, atol=1e-1, rtol=1e-1), \
        float(jnp.abs(out_bf16 - ref).max())

    print("KERNEL_OK")
</pallas_src>

<mosaic_0001>
module attributes {stable_mosaic.version = 11 : i64} {
  func.func @kernel(%arg0: i32, %arg1: memref<8x16xf32, #tpu.memory_space<vmem>>, %arg2: memref<2x16x32xf32, #tpu.memory_space<vmem>>, %arg3: memref<2x1x32xf32, #tpu.memory_space<vmem>>, %arg4: memref<2x32x32xf32, #tpu.memory_space<vmem>>, %arg5: memref<2x1x32xf32, #tpu.memory_space<vmem>>, %arg6: memref<2x32x32xf32, #tpu.memory_space<vmem>>, %arg7: memref<2x1x32xf32, #tpu.memory_space<vmem>>, %arg8: memref<1x32xf32, #tpu.memory_space<vmem>>, %arg9: memref<1x32xf32, #tpu.memory_space<vmem>>, %arg10: memref<2x32x8xf32, #tpu.memory_space<vmem>>, %arg11: memref<2x1x8xf32, #tpu.memory_space<vmem>>, %arg12: memref<2x8x8xf32, #tpu.memory_space<vmem>>) attributes {dimension_semantics = [#tpu.dimension_semantics<parallel>], iteration_bounds = array<i64: 2>, scalar_prefetch = 0 : i64, scratch_operands = 0 : i64, tpu.core_type = #tpu.core_type<tc>, window_params = [{pipeline_mode = #tpu.pipeline_mode<synchronous>, transform_indices = @transform_0, window_bounds = array<i64: 8, 16>}, {transform_indices = @transform_1, window_bounds = array<i64: 2, 16, 32>}, {transform_indices = @transform_2, window_bounds = array<i64: 2, 1, 32>}, {transform_indices = @transform_3, window_bounds = array<i64: 2, 32, 32>}, {transform_indices = @transform_4, window_bounds = array<i64: 2, 1, 32>}, {transform_indices = @transform_5, window_bounds = array<i64: 2, 32, 32>}, {transform_indices = @transform_6, window_bounds = array<i64: 2, 1, 32>}, {pipeline_mode = #tpu.pipeline_mode<synchronous>, transform_indices = @transform_7, window_bounds = array<i64: 1, 32>}, {pipeline_mode = #tpu.pipeline_mode<synchronous>, transform_indices = @transform_8, window_bounds = array<i64: 1, 32>}, {transform_indices = @transform_9, window_bounds = array<i64: 2, 32, 8>}, {transform_indices = @transform_10, window_bounds = array<i64: 2, 1, 8>}, {transform_indices = @transform_11, window_bounds = array<i64: 2, 8, 8>}]} {
    %c0 = arith.constant 0 : index
    %c0_0 = arith.constant 0 : index
    %0 = vector.load %arg8[%c0, %c0_0] : memref<1x32xf32, #tpu.memory_space<vmem>>, vector<1x32xf32>
    %c0_1 = arith.constant 0 : index
    %c0_2 = arith.constant 0 : index
    %1 = vector.load %arg9[%c0_1, %c0_2] : memref<1x32xf32, #tpu.memory_space<vmem>>, vector<1x32xf32>
    %c0_3 = arith.constant 0 : index
    %c0_4 = arith.constant 0 : index
    %2 = vector.load %arg1[%c0_3, %c0_4] : memref<8x16xf32, #tpu.memory_space<vmem>>, vector<8x16xf32>
    %c0_5 = arith.constant 0 : index
    %c0_6 = arith.constant 0 : index
    %c0_7 = arith.constant 0 : index
    %3 = vector.load %arg2[%c0_5, %c0_6, %c0_7] : memref<2x16x32xf32, #tpu.memory_space<vmem>>, vector<1x16x32xf32>
    %4 = vector.shape_cast %3 : vector<1x16x32xf32> to vector<16x32xf32>
    %cst = arith.constant dense<0.000000e+00> : vector<8x32xf32>
    %5 = tpu.matmul %2, %4, %cst {dimension_numbers = #tpu.dot_dimension_numbers<[1], [0], [0], [1], [0, 0, 1, 1], [], []>} : vector<8x16xf32>, vector<16x32xf32>, vector<8x32xf32> -> vector<8x32xf32>
    %c0_8 = arith.constant 0 : index
    %c0_9 = arith.constant 0 : index
    %c0_10 = arith.constant 0 : index
    %6 = vector.load %arg3[%c0_8, %c0_9, %c0_10] : memref<2x1x32xf32, #tpu.memory_space<vmem>>, vector<1x1x32xf32>
    %7 = vector.shape_cast %6 : vector<1x1x32xf32> to vector<1x32xf32>
    %8 = vector.broadcast %7 : vector<1x32xf32> to vector<8x32xf32>
    %9 = arith.addf %5, %8 : vector<8x32xf32>
    %c0_11 = arith.constant 0 : index
    %c0_12 = arith.constant 0 : index
    %c0_13 = arith.constant 0 : index
    %10 = vector.load %arg4[%c0_11, %c0_12, %c0_13] : memref<2x32x32xf32, #tpu.memory_space<vmem>>, vector<1x32x32xf32>
    %11 = vector.shape_cast %10 : vector<1x32x32xf32> to vector<32x32xf32>
    %cst_14 = arith.constant dense<0.000000e+00> : vector<8x32xf32>
    %12 = tpu.matmul %9, %11, %cst_14 {dimension_numbers = #tpu.dot_dimension_numbers<[1], [0], [0], [1], [0, 0, 1, 1], [], []>} : vector<8x32xf32>, vector<32x32xf32>, vector<8x32xf32> -> vector<8x32xf32>
    %c0_15 = arith.constant 0 : index
    %c0_16 = arith.constant 0 : index
    %c0_17 = arith.constant 0 : index
    %13 = vector.load %arg5[%c0_15, %c0_16, %c0_17] : memref<2x1x32xf32, #tpu.memory_space<vmem>>, vector<1x1x32xf32>
    %14 = vector.shape_cast %13 : vector<1x1x32xf32> to vector<1x32xf32>
    %15 = vector.broadcast %14 : vector<1x32xf32> to vector<8x32xf32>
    %16 = arith.addf %12, %15 : vector<8x32xf32>
    %cst_18 = arith.constant 0.000000e+00 : f32
    %17 = vector.broadcast %cst_18 : f32 to vector<8x32xf32>
    %18 = arith.maximumf %16, %17 : vector<8x32xf32>
    %c0_19 = arith.constant 0 : index
    %c0_20 = arith.constant 0 : index
    %c0_21 = arith.constant 0 : index
    %19 = vector.load %arg6[%c0_19, %c0_20, %c0_21] : memref<2x32x32xf32, #tpu.memory_space<vmem>>, vector<1x32x32xf32>
    %20 = vector.shape_cast %19 : vector<1x32x32xf32> to vector<32x32xf32>
    %cst_22 = arith.constant dense<0.000000e+00> : vector<8x32xf32>
    %21 = tpu.matmul %18, %20, %cst_22 {dimension_numbers = #tpu.dot_dimension_numbers<[1], [0], [0], [1], [0, 0, 1, 1], [], []>} : vector<8x32xf32>, vector<32x32xf32>, vector<8x32xf32> -> vector<8x32xf32>
    %c0_23 = arith.constant 0 : index
    %c0_24 = arith.constant 0 : index
    %c0_25 = arith.constant 0 : index
    %22 = vector.load %arg7[%c0_23, %c0_24, %c0_25] : memref<2x1x32xf32, #tpu.memory_space<vmem>>, vector<1x1x32xf32>
    %23 = vector.shape_cast %22 : vector<1x1x32xf32> to vector<1x32xf32>
    %24 = vector.broadcast %23 : vector<1x32xf32> to vector<8x32xf32>
    %25 = arith.addf %21, %24 : vector<8x32xf32>
    %cst_26 = arith.constant 0.000000e+00 : f32
    %26 = vector.broadcast %cst_26 : f32 to vector<8x32xf32>
    %27 = arith.maximumf %25, %26 : vector<8x32xf32>
    %28 = arith.addf %9, %27 : vector<8x32xf32>
    %cst_27 = arith.constant dense<0.000000e+00> : vector<8xf32>
    %29 = vector.multi_reduction <add>, %28, %cst_27 [1] : vector<8x32xf32> to vector<8xf32>
    %30 = vector.shape_cast %29 : vector<8xf32> to vector<8x1xf32>
    %cst_28 = arith.constant 3.200000e+01 : f32
    %31 = vector.broadcast %cst_28 : f32 to vector<8x1xf32>
    %32 = arith.divf %30, %31 : vector<8x1xf32>
    %33 = vector.broadcast %32 : vector<8x1xf32> to vector<8x32xf32>
    %34 = arith.subf %28, %33 : vector<8x32xf32>
    %35 = arith.mulf %34, %34 : vector<8x32xf32>
    %cst_29 = arith.constant dense<0.000000e+00> : vector<8xf32>
    %36 = vector.multi_reduction <add>, %35, %cst_29 [1] : vector<8x32xf32> to vector<8xf32>
    %37 = vector.shape_cast %36 : vector<8xf32> to vector<8x1xf32>
    %cst_30 = arith.constant 3.200000e+01 : f32
    %38 = vector.broadcast %cst_30 : f32 to vector<8x1xf32>
    %39 = arith.divf %37, %38 : vector<8x1xf32>
    %cst_31 = arith.constant 9.99999974E-6 : f32
    %40 = vector.broadcast %cst_31 : f32 to vector<8x1xf32>
    %41 = arith.addf %39, %40 : vector<8x1xf32>
    %42 = math.rsqrt %41 : vector<8x1xf32>
    %43 = vector.broadcast %42 : vector<8x1xf32> to vector<8x32xf32>
    %44 = arith.mulf %34, %43 : vector<8x32xf32>
    %45 = vector.broadcast %0 : vector<1x32xf32> to vector<8x32xf32>
    %46 = arith.mulf %44, %45 : vector<8x32xf32>
    %47 = vector.broadcast %1 : vector<1x32xf32> to vector<8x32xf32>
    %48 = arith.addf %46, %47 : vector<8x32xf32>
    %c0_32 = arith.constant 0 : index
    %c0_33 = arith.constant 0 : index
    %c0_34 = arith.constant 0 : index
    %49 = vector.load %arg10[%c0_32, %c0_33, %c0_34] : memref<2x32x8xf32, #tpu.memory_space<vmem>>, vector<1x32x8xf32>
    %50 = vector.shape_cast %49 : vector<1x32x8xf32> to vector<32x8xf32>
    %cst_35 = arith.constant dense<0.000000e+00> : vector<8x8xf32>
    %51 = tpu.matmul %48, %50, %cst_35 {dimension_numbers = #tpu.dot_dimension_numbers<[1], [0], [0], [1], [0, 0, 1, 1], [], []>} : vector<8x32xf32>, vector<32x8xf32>, vector<8x8xf32> -> vector<8x8xf32>
    %c0_36 = arith.constant 0 : index
    %c0_37 = arith.constant 0 : index
    %c0_38 = arith.constant 0 : index
    %52 = vector.load %arg11[%c0_36, %c0_37, %c0_38] : memref<2x1x8xf32, #tpu.memory_space<vmem>>, vector<1x1x8xf32>
    %53 = vector.shape_cast %52 : vector<1x1x8xf32> to vector<1x8xf32>
    %54 = vector.broadcast %53 : vector<1x8xf32> to vector<8x8xf32>
    %55 = arith.addf %51, %54 : vector<8x8xf32>
    %c0_39 = arith.constant 0 : index
    %c0_40 = arith.constant 0 : index
    %c0_41 = arith.constant 0 : index
    %56 = vector.load %arg12[%c0_39, %c0_40, %c0_41] : memref<2x8x8xf32, #tpu.memory_space<vmem>>, vector<1x8x8xf32>
    %57 = vector.shape_cast %56 : vector<1x8x8xf32> to vector<8x8xf32>
    %58 = vector.shape_cast %55 : vector<8x8xf32> to vector<1x8x8xf32>
    tpu.vector_store %arg12[%c0_39, %c0_40, %c0_41], %58 {strides = array<i32>} : memref<2x8x8xf32, #tpu.memory_space<vmem>>, vector<1x8x8xf32>,
    %c1 = arith.constant 1 : index
    %c0_42 = arith.constant 0 : index
    %c0_43 = arith.constant 0 : index
    %59 = vector.load %arg2[%c1, %c0_42, %c0_43] : memref<2x16x32xf32, #tpu.memory_space<vmem>>, vector<1x16x32xf32>
    %60 = vector.shape_cast %59 : vector<1x16x32xf32> to vector<16x32xf32>
    %cst_44 = arith.constant dense<0.000000e+00> : vector<8x32xf32>
    %61 = tpu.matmul %2, %60, %cst_44 {dimension_numbers = #tpu.dot_dimension_numbers<[1], [0], [0], [1], [0, 0, 1, 1], [], []>} : vector<8x16xf32>, vector<16x32xf32>, vector<8x32xf32> -> vector<8x32xf32>
    %c1_45 = arith.constant 1 : index
    %c0_46 = arith.constant 0 : index
    %c0_47 = arith.constant 0 : index
    %62 = vector.load %arg3[%c1_45, %c0_46, %c0_47] : memref<2x1x32xf32, #tpu.memory_space<vmem>>, vector<1x1x32xf32>
    %63 = vector.shape_cast %62 : vector<1x1x32xf32> to vector<1x32xf32>
    %64 = vector.broadcast %63 : vector<1x32xf32> to vector<8x32xf32>
    %65 = arith.addf %61, %64 : vector<8x32xf32>
    %c1_48 = arith.constant 1 : index
    %c0_49 = arith.constant 0 : index
    %c0_50 = arith.constant 0 : index
    %66 = vector.load %arg4[%c1_48, %c0_49, %c0_50] : memref<2x32x32xf32, #tpu.memory_space<vmem>>, vector<1x32x32xf32>
    %67 = vector.shape_cast %66 : vector<1x32x32xf32> to vector<32x32xf32>
    %cst_51 = arith.constant dense<0.000000e+00> : vector<8x32xf32>
    %68 = tpu.matmul %65, %67, %cst_51 {dimension_numbers = #tpu.dot_dimension_numbers<[1], [0], [0], [1], [0, 0, 1, 1], [], []>} : vector<8x32xf32>, vector<32x32xf32>, vector<8x32xf32> -> vector<8x32xf32>
    %c1_52 = arith.constant 1 : index
    %c0_53 = arith.constant 0 : index
    %c0_54 = arith.constant 0 : index
    %69 = vector.load %arg5[%c1_52, %c0_53, %c0_54] : memref<2x1x32xf32, #tpu.memory_space<vmem>>, vector<1x1x32xf32>
    %70 = vector.shape_cast %69 : vector<1x1x32xf32> to vector<1x32xf32>
    %71 = vector.broadcast %70 : vector<1x32xf32> to vector<8x32xf32>
    %72 = arith.addf %68, %71 : vector<8x32xf32>
    %cst_55 = arith.constant 0.000000e+00 : f32
    %73 = vector.broadcast %cst_55 : f32 to vector<8x32xf32>
    %74 = arith.maximumf %72, %73 : vector<8x32xf32>
    %c1_56 = arith.constant 1 : index
    %c0_57 = arith.constant 0 : index
    %c0_58 = arith.constant 0 : index
    %75 = vector.load %arg6[%c1_56, %c0_57, %c0_58] : memref<2x32x32xf32, #tpu.memory_space<vmem>>, vector<1x32x32xf32>
    %76 = vector.shape_cast %75 : vector<1x32x32xf32> to vector<32x32xf32>
    %cst_59 = arith.constant dense<0.000000e+00> : vector<8x32xf32>
    %77 = tpu.matmul %74, %76, %cst_59 {dimension_numbers = #tpu.dot_dimension_numbers<[1], [0], [0], [1], [0, 0, 1, 1], [], []>} : vector<8x32xf32>, vector<32x32xf32>, vector<8x32xf32> -> vector<8x32xf32>
    %c1_60 = arith.constant 1 : index
    %c0_61 = arith.constant 0 : index
    %c0_62 = arith.constant 0 : index
    %78 = vector.load %arg7[%c1_60, %c0_61, %c0_62] : memref<2x1x32xf32, #tpu.memory_space<vmem>>, vector<1x1x32xf32>
    %79 = vector.shape_cast %78 : vector<1x1x32xf32> to vector<1x32xf32>
    %80 = vector.broadcast %79 : vector<1x32xf32> to vector<8x32xf32>
    %81 = arith.addf %77, %80 : vector<8x32xf32>
    %cst_63 = arith.constant 0.000000e+00 : f32
    %82 = vector.broadcast %cst_63 : f32 to vector<8x32xf32>
    %83 = arith.maximumf %81, %82 : vector<8x32xf32>
    %84 = arith.addf %65, %83 : vector<8x32xf32>
    %cst_64 = arith.constant dense<0.000000e+00> : vector<8xf32>
    %85 = vector.multi_reduction <add>, %84, %cst_64 [1] : vector<8x32xf32> to vector<8xf32>
    %86 = vector.shape_cast %85 : vector<8xf32> to vector<8x1xf32>
    %cst_65 = arith.constant 3.200000e+01 : f32
    %87 = vector.broadcast %cst_65 : f32 to vector<8x1xf32>
    %88 = arith.divf %86, %87 : vector<8x1xf32>
    %89 = vector.broadcast %88 : vector<8x1xf32> to vector<8x32xf32>
    %90 = arith.subf %84, %89 : vector<8x32xf32>
    %91 = arith.mulf %90, %90 : vector<8x32xf32>
    %cst_66 = arith.constant dense<0.000000e+00> : vector<8xf32>
    %92 = vector.multi_reduction <add>, %91, %cst_66 [1] : vector<8x32xf32> to vector<8xf32>
    %93 = vector.shape_cast %92 : vector<8xf32> to vector<8x1xf32>
    %cst_67 = arith.constant 3.200000e+01 : f32
    %94 = vector.broadcast %cst_67 : f32 to vector<8x1xf32>
    %95 = arith.divf %93, %94 : vector<8x1xf32>
    %cst_68 = arith.constant 9.99999974E-6 : f32
    %96 = vector.broadcast %cst_68 : f32 to vector<8x1xf32>
    %97 = arith.addf %95, %96 : vector<8x1xf32>
    %98 = math.rsqrt %97 : vector<8x1xf32>
    %99 = vector.broadcast %98 : vector<8x1xf32> to vector<8x32xf32>
    %100 = arith.mulf %90, %99 : vector<8x32xf32>
    %101 = vector.broadcast %0 : vector<1x32xf32> to vector<8x32xf32>
    %102 = arith.mulf %100, %101 : vector<8x32xf32>
    %103 = vector.broadcast %1 : vector<1x32xf32> to vector<8x32xf32>
    %104 = arith.addf %102, %103 : vector<8x32xf32>
    %c1_69 = arith.constant 1 : index
    %c0_70 = arith.constant 0 : index
    %c0_71 = arith.constant 0 : index
    %105 = vector.load %arg10[%c1_69, %c0_70, %c0_71] : memref<2x32x8xf32, #tpu.memory_space<vmem>>, vector<1x32x8xf32>
    %106 = vector.shape_cast %105 : vector<1x32x8xf32> to vector<32x8xf32>
    %cst_72 = arith.constant dense<0.000000e+00> : vector<8x8xf32>
    %107 = tpu.matmul %104, %106, %cst_72 {dimension_numbers = #tpu.dot_dimension_numbers<[1], [0], [0], [1], [0, 0, 1, 1], [], []>} : vector<8x32xf32>, vector<32x8xf32>, vector<8x8xf32> -> vector<8x8xf32>
    %c1_73 = arith.constant 1 : index
    %c0_74 = arith.constant 0 : index
    %c0_75 = arith.constant 0 : index
    %108 = vector.load %arg11[%c1_73, %c0_74, %c0_75] : memref<2x1x8xf32, #tpu.memory_space<vmem>>, vector<1x1x8xf32>
    %109 = vector.shape_cast %108 : vector<1x1x8xf32> to vector<1x8xf32>
    %110 = vector.broadcast %109 : vector<1x8xf32> to vector<8x8xf32>
    %111 = arith.addf %107, %110 : vector<8x8xf32>
    %c1_76 = arith.constant 1 : index
    %c0_77 = arith.constant 0 : index
    %c0_78 = arith.constant 0 : index
    %112 = vector.load %arg12[%c1_76, %c0_77, %c0_78] : memref<2x8x8xf32, #tpu.memory_space<vmem>>, vector<1x8x8xf32>
    %113 = vector.shape_cast %112 : vector<1x8x8xf32> to vector<8x8xf32>
    %114 = vector.shape_cast %111 : vector<8x8xf32> to vector<1x8x8xf32>
    tpu.vector_store %arg12[%c1_76, %c0_77, %c0_78], %114 {strides = array<i32>} : memref<2x8x8xf32, #tpu.memory_space<vmem>>, vector<1x8x8xf32>,
    return
  }
  func.func @transform_0(%arg0: i32) -> (i32, i32) {
    %c0_i32 = arith.constant 0 : i32
    %c0_i32_0 = arith.constant 0 : i32
    %c0_i32_1 = arith.constant 0 : i32
    return %c0_i32, %c0_i32_0 : i32, i32
  }
  func.func @transform_1(%arg0: i32) -> (i32, i32, i32) {
    %c0_i32 = arith.constant 0 : i32
    %c0_i32_0 = arith.constant 0 : i32
    %c0_i32_1 = arith.constant 0 : i32
    return %arg0, %c0_i32, %c0_i32_0 : i32, i32, i32
  }
  func.func @transform_2(%arg0: i32) -> (i32, i32, i32) {
    %c0_i32 = arith.constant 0 : i32
    %c0_i32_0 = arith.constant 0 : i32
    %c0_i32_1 = arith.constant 0 : i32
    return %arg0, %c0_i32, %c0_i32_0 : i32, i32, i32
  }
  func.func @transform_3(%arg0: i32) -> (i32, i32, i32) {
    %c0_i32 = arith.constant 0 : i32
    %c0_i32_0 = arith.constant 0 : i32
    %c0_i32_1 = arith.constant 0 : i32
    return %arg0, %c0_i32, %c0_i32_0 : i32, i32, i32
  }
  func.func @transform_4(%arg0: i32) -> (i32, i32, i32) {
    %c0_i32 = arith.constant 0 : i32
    %c0_i32_0 = arith.constant 0 : i32
    %c0_i32_1 = arith.constant 0 : i32
    return %arg0, %c0_i32, %c0_i32_0 : i32, i32, i32
  }
  func.func @transform_5(%arg0: i32) -> (i32, i32, i32) {
    %c0_i32 = arith.constant 0 : i32
    %c0_i32_0 = arith.constant 0 : i32
    %c0_i32_1 = arith.constant 0 : i32
    return %arg0, %c0_i32, %c0_i32_0 : i32, i32, i32
  }
  func.func @transform_6(%arg0: i32) -> (i32, i32, i32) {
    %c0_i32 = arith.constant 0 : i32
    %c0_i32_0 = arith.constant 0 : i32
    %c0_i32_1 = arith.constant 0 : i32
    return %arg0, %c0_i32, %c0_i32_0 : i32, i32, i32
  }
  func.func @transform_7(%arg0: i32) -> (i32, i32) {
    %c0_i32 = arith.constant 0 : i32
    %c0_i32_0 = arith.constant 0 : i32
    %c0_i32_1 = arith.constant 0 : i32
    return %c0_i32, %c0_i32_0 : i32, i32
  }
  func.func @transform_8(%arg0: i32) -> (i32, i32) {
    %c0_i32 = arith.constant 0 : i32
    %c0_i32_0 = arith.constant 0 : i32
    %c0_i32_1 = arith.constant 0 : i32
    return %c0_i32, %c0_i32_0 : i32, i32
  }
  func.func @transform_9(%arg0: i32) -> (i32, i32, i32) {
    %c0_i32 = arith.constant 0 : i32
    %c0_i32_0 = arith.constant 0 : i32
    %c0_i32_1 = arith.constant 0 : i32
    return %arg0, %c0_i32, %c0_i32_0 : i32, i32, i32
  }
  func.func @transform_10(%arg0: i32) -> (i32, i32, i32) {
    %c0_i32 = arith.constant 0 : i32
    %c0_i32_0 = arith.constant 0 : i32
    %c0_i32_1 = arith.constant 0 : i32
    return %arg0, %c0_i32, %c0_i32_0 : i32, i32, i32
  }
  func.func @transform_11(%arg0: i32) -> (i32, i32, i32) {
    %c0_i32 = arith.constant 0 : i32
    %c0_i32_0 = arith.constant 0 : i32
    %c0_i32_1 = arith.constant 0 : i32
    return %arg0, %c0_i32, %c0_i32_0 : i32, i32, i32
  }
}

</mosaic_0001>

<bundles_post_ra>
// kernel: tpu_custom_call.1
= control target key start
LH: loop header
LB: loop body
LE: loop exit
PB: predicated region body
PF: predicated region fallthrough
CT: control target
= control target key end

     0   :  { %s2295_s0 = inlined_call_operand.vmem [shape: f32[8,16], index: 0, kind: input, shape index: {}]   ;;  %s2296_s1 = inlined_call_operand.hbm [shape: f32[4,16,32], index: 1, kind: input, shape index: {}]   ;;  %s2297_s2 = inlined_call_operand.vmem [shape: f32[4,1,32], index: 2, kind: input, shape index: {}]   ;;  %s2298_s3 = inlined_call_operand.vmem [shape: f32[4,32,32], index: 3, kind: input, shape index: {}]   ;;  %s2299_s4 = inlined_call_operand.vmem [shape: f32[4,1,32], index: 4, kind: input, shape index: {}]   ;;  %s2300_s5 = inlined_call_operand.hbm [shape: f32[4,32,32], index: 5, kind: input, shape index: {}]   ;;  %s2301_s6 = inlined_call_operand.vmem [shape: f32[4,1,32], index: 6, kind: input, shape index: {}]   ;;  %s2302_s7 = inlined_call_operand.vmem [shape: f32[1,32], index: 7, kind: input, shape index: {}]   ;;  %s2303_s8 = inlined_call_operand.vmem [shape: f32[1,32], index: 8, kind: input, shape index: {}]   ;;  %s2304_s9 = inlined_call_operand.vmem [shape: f32[4,32,8], index: 9, kind: input, shape index: {}]   ;;  %s2305_s10 = inlined_call_operand.vmem [shape: f32[4,1,8], index: 10, kind: input, shape index: {}]   ;;  %s2306_s11 = inlined_call_operand.hbm [shape: f32[4,8,8], index: 11, kind: output, shape index: {}]  }
   0x1   :  { %2315 = sst [smem:[#allocation16_spill]] %s2296_s1 }
   0x2   :  { %16 = vsyncpa [#allocation3], 0 }
   0x3   :  { %18 = vsyncpa [#allocation3 + $0x1], 0 }
   0x4   :  { %19 = vsyncpa [#allocation6], 0 }
   0x5   :  { %21 = vsyncpa [#allocation6 + $0x1], 0 }
   0x6   :  { %22 = vsyncpa [#allocation4], 0 }
   0x7   :  { %24 = vsyncpa [#allocation4 + $0x1], 0  ;;  %s1923_s17 = smov 0   ;;  %s1925_s18 = smov 0  }
   0x8   :  { %s1927_s19 = smov 0   ;;  %s1929_s20 = smov 0  }
   0x9 LB: > { %2316 = sst [smem:[#allocation11_spill]] %s1840_s17  ;;  %s1944_s21 = sadd.s32 4294967295, %s1852_s20   ;;  %s1852_s20 = sphi %s1929_s20, %s2336_s20   ;;  %s1848_s19 = sphi %s1927_s19, %s2338_s19   ;;  %s1844_s18 = sphi %s1925_s18, %s2340_s18   ;;  %s1840_s17 = sphi %s1923_s17, %s2339_s17  }
   0xa   : > { %2317 = sst [smem:[#allocation12_spill]] %s1848_s19  ;;  %s1477_s22 = sadd.s32 4294967294, %s1852_s20  }
   0xb   : > { %s1948_s23 = sadd.s32 1, %s1852_s20   ;;  %s58_s24 = sadd.s32 1, %s1848_s19 }
   0xc   : > { %2318 = sst [smem:[#allocation13_spill]] %s1948_s23  ;;  %s55_s25 = ssub.s32 %s1852_s20, %s1948_s23 }
   0xd   : > { %p65_p0 = scmp.ne.s32.totalorder %s1848_s19, %s1844_s18  ;;  %p56_p1 = scmp.eq.s32.totalorder %s55_s25, 0 }
   0xe   : > { %p66_p2 = scmp.eq.s32.totalorder %s1852_s20, 0  ;;  %p71_p3 = scmp.ne.s32.totalorder %s1844_s18, %s1840_s17 }
   0xf   : > { %p72_p4 = scmp.eq.s32.totalorder %s1944_s21, 0  ;;  %p319_p7 = scmp.eq.s32.totalorder %s1944_s21, 1 }
  0x10   : > { %s1960_s26 = scalar_select %p56_p1, %s1848_s19, %s58_s24  }
  0x11   : > { %p1962_p5 = por %p66_p2, %p65_p0  ;;  %p1966_p6 = por %p72_p4, %p71_p3 }
  0x12   : > { %2319 = sst [smem:[#allocation14_spill]] %s1960_s26  ;;  %p325_p8 = scmp.eq.s32.totalorder %s1477_s22, 1 }
  0x13   : > { %s2321_s28 = scalar_select %p1966_p6, 1, 0 }
  0x14   : > { %p1684_p10 = scmp.lt.s32.totalorder %s1852_s20, 2  ;;  %p1973_p11 = por %p319_p7, %p65_p0 }
  0x15   : > { %p1977_p12 = por %p325_p8, %p71_p3  ;;  %s1982_s12 = sand.u32 1, %s1848_s19  }
  0x16   : > { %s2322_s29 = scalar_select %p1973_p11, 1, 0 }
  0x17   : > { %s2323_s30 = scalar_select %p1977_p12, 1, 0 }
  0x18   : > { %s1545_s13 = sshll.u32 %s1852_s20, 9  ;;  %s1480_s14 = sshll.u32 %s1982_s12, 5 }
  0x19   : > { %2324 = sst [smem:[#allocation15_spill]] %s2323_s30  ;;  %s358_s24 = scalar_lea.vmem [#allocation2], %s1480_s14 }
  0x1a   : > { %s2325_s1 = sld [smem:[#allocation16_spill]]  ;;  %s366_s25 = sshll.u32 %s358_s24, 4  ;;  %s1997_s25 = int_to_ptr.vmem [resolvable:$true] %s366_s25 }
  0x1b   : > { %p1993_p13 = pnand %p1684_p10, %p1962_p5 }
  0x1d   : > { %p1730_p1 = pneg %p1993_p13 }
  0x20   : > { %s1989_s22 = scalar_lea.hbm %s2325_s1, %s1545_s13  ;;  %s1733_s27 = scalar_lea.hbm %s2325_s1, 1024 }
  0x21   : > { %s1728_s23 = scalar_lea.hbm %s1989_s22, 512  ;;  %p1734_p4 = scmp.lt.s32.totalorder %s1989_s22, %s2325_s1 }
  0x22   : > { %p1729_p0 = scmp.ne.s32.totalorder %s1989_s22, %s1728_s23  ;;  %p1735_p5 = scmp.lt.s32.totalorder %s1733_s27, %s1728_s23 }
  0x24   : > { %p1731_p2 = pnand %p1730_p1, %p1729_p0  ;;  %p1736_p7 = por %p1735_p5, %p1734_p4 }
  0x26   : > { %p1732_p3 = pneg %p1731_p2 }
  0x28   : > { %p1737_p8 = pnand %p1736_p7, %p1732_p3 }
  0x2a   : > { %1740 = shalt.err (!%p1737_p8)
}
  0x2b   : > { %s1741_s24 = scalar_lea.vmem %s1997_s25, 512  ;;  %s1854_s13 = smov [#allocation2]  }
  0x2c   : > { %p1742_p10 = scmp.ne.s32.totalorder %s1997_s25, %s1741_s24  ;;  %s1746_s14 = sshll.u32 %s1854_s13, 4  ;;  %s1747_s14 = int_to_ptr.vmem [resolvable:$false] %s1746_s14 }
  0x2d   : > { %s1748_s19 = scalar_lea.vmem %s1747_s14, 1024  ;;  %p1749_p9 = scmp.lt.s32.totalorder %s1997_s25, %s1747_s14 }
  0x2e   : > { %p1744_p0 = pnand %p1742_p10, %p1730_p1  ;;  %p1750_p12 = scmp.lt.s32.totalorder %s1748_s19, %s1741_s24 }
  0x30   : > { %p1745_p2 = pneg %p1744_p0  ;;  %p1751_p11 = por %p1750_p12, %p1749_p9 }
  0x32   : > { %p1752_p4 = pnand %p1751_p11, %p1745_p2 }
  0x34   : > { %1755 = shalt.err (!%p1752_p4)
}
  0x35   : > { %s2313_s23 = smov 128   ;;  %s1856_s27 = smov 8  }
  0x36   : > { %s2327_s19 = scalar_lea.sflag [#allocation3], %s1982_s12  ;;  %p1488_p9 = scmp.ge.s32.totalorder %s1852_s20, 1 }
  0x37   : > { %1676 = dma.hbm_to_vmem [thread:$0]  (!%p1993_p13), %s1989_s22, 512, %s1997_s25, %s2327_s19, %s2313_s23, %s2313_s23, %s1856_s27  }
  0x38   : > { %p448_p11 = scmp.lt.s32.totalorder %s1852_s20, 3  ;;  %s1484_s15 = sshll.u32 %s1982_s12, 6 }
  0x39   : > { %s1547_s24 = sshll.u32 %s1852_s20, 10  ;;  %s406_s13 = scalar_lea.vmem [#allocation5], %s1484_s15 }
  0x3a   : > { %p2032_p12 = pnand %p1488_p9, %p448_p11  ;;  %s414_s14 = sshll.u32 %s406_s13, 4  ;;  %s2042_s14 = int_to_ptr.vmem [resolvable:$true] %s414_s14 }
  0x3b   : > { %s2040_s17 = scalar_lea.hbm %s2300_s5, %s1547_s24  ;;  %s403_s22 = scalar_lea.sflag [#allocation6], %s1982_s12 }
  0x3c   : > { %s1756_s25 = scalar_lea.hbm %s2040_s17, 1024  ;;  %s1761_s13 = scalar_lea.hbm %s2300_s5, 2048 }
  0x3d   : > { %p1757_p3 = scmp.ne.s32.totalorder %s2040_s17, %s1756_s25  ;;  %p1762_p8 = scmp.lt.s32.totalorder %s2040_s17, %s2300_s5 }
  0x3e   : > { %p1763_p10 = scmp.lt.s32.totalorder %s1761_s13, %s1756_s25 }
  0x3f   : > { %p1759_p5 = pnand %p1757_p3, %p1730_p1 }
  0x40   : > { %p1764_p0 = por %p1763_p10, %p1762_p8 }
  0x41   : > { %p1760_p7 = pneg %p1759_p5 }
  0x43   : > { %p1765_p2 = pnand %p1764_p0, %p1760_p7 }
  0x45   : > { %1768 = shalt.err (!%p1765_p2)
}
  0x46   : > { %s1769_s30 = scalar_lea.vmem %s2042_s14, 1024  ;;  %s1857_s12 = smov [#allocation5]  }
  0x47   : > { %p1770_p4 = scmp.ne.s32.totalorder %s2042_s14, %s1769_s30  ;;  %s1774_s24 = sshll.u32 %s1857_s12, 4  ;;  %s1775_s24 = int_to_ptr.vmem [resolvable:$false] %s1774_s24 }
  0x48   : > { %s1776_s19 = scalar_lea.vmem %s1775_s24, 2048  ;;  %p1777_p3 = scmp.lt.s32.totalorder %s2042_s14, %s1775_s24 }
  0x49   : > { %p1772_p9 = pnand %p1770_p4, %p1730_p1  ;;  %p1778_p5 = scmp.lt.s32.totalorder %s1776_s19, %s1769_s30 }
  0x4b   : > { %p1773_p11 = pneg %p1772_p9  ;;  %p1779_p6 = por %p1778_p5, %p1777_p3 }
  0x4d   : > { %p1780_p8 = pnand %p1779_p6, %p1773_p11 }
  0x4f   : > { %1783 = shalt.err (!%p1780_p8)
}
  0x50   : > { %s2329_s23 = smov 128   ;;  %452 = sbr.rel (%p2032_p12) target bundleno = 1718 (0x6b6), region = 64 }
  0x51   : > { %1679 = dma.hbm_to_vmem [thread:$0]  (!%p1993_p13), %s2040_s17, 1024, %s2042_s14, %s403_s22, %s2329_s23, %s2329_s23, %s1856_s27  }
  0x52   : > { %s2073_s25 = sand.u32 (!%p2032_p12), 1, %s1844_s18   ;;  %p2330_p6 = scmp.ne.s32.totalorder (!%p2032_p12), %s2321_s28, 0 }
  0x53   : > { %s1489_s15 = sshll.u32 (!%p2032_p12), %s2073_s25, 5  ;;  %s455_s13 = scalar_lea.sflag (!%p2032_p12), [#allocation3], %s2073_s25 }
  0x54   : > { %s2077_s1 = scalar_lea.vmem (!%p2032_p12), [#allocation2], %s1489_s15 }
  0x55   : > { %1827 = dma.done.wait (%p2330_p6), %s455_s13, 512  }
  0x56   : > { %1829 = vsyncadd (%p2330_p6), %s455_s13, 4294966784  ;;  %s1490_s17 = sshll.u32 %s2073_s25, 6  ;;  %s464_s26 = scalar_lea.sflag [#allocation6], %s2073_s25 }
  0x57   : > { %s2085_s27 = scalar_lea.vmem [#allocation5], %s1490_s17 }
  0x58   : > { %1831 = dma.done.wait (%p2330_p6), %s464_s26, 1024  }
  0x59   : > { %1833 = vsyncadd (%p2330_p6), %s464_s26, 4294966272  ;;  %s1492_s16 = sshll.u32 %s1944_s21, 1  ;;  %v1858_v0 = vmov 0.0   ;;  %vm1859_vm0 = vmmov 0   ;;  %v580_v1 = vld [vmem:[%s2077_s1 + $0x8] sm:$0xff]  ;;  %v579_v2 = vld [vmem:[%s2077_s1] sm:$0xff] }
  0x5a   : > { %1587 = vmatprep.subr.mxu1 %v1858_v0  ;;  %1591 = vmatprep.mubr.msk.f32.mxu1 %vm1859_vm0, %v1858_v0  ;;  %p541_p13 = scmp.lt.s32.totalorder %s1492_s16, 3  ;;  %v578_v3 = vld [vmem:[%s2295_s0] sm:$0xff]  ;;  %vm588_vm1 = vcmask 130048   ;;  %v751_v8 = vld [vmem:[%s2085_s27 + $0x18] sm:$0xff]  ;;  %vm673_vm2 = vcmask 261120   ;;  %v750_v13 = vld [vmem:[%s2085_s27 + $0x10] sm:$0xff] }
  0x5b   : > { %1605 = vmatprep.subr.mxu0 %v1858_v0  ;;  %1613 = vmatprep.mubr.msk.f32.mxu0 %vm1859_vm0, %v1858_v0  ;;  %v749_v14 = vld [vmem:[%s2085_s27 + $0x8] sm:$0xff]  ;;  %v748_v15 = vld [vmem:[%s2085_s27] sm:$0xff]  ;;  %v1513_v21 = vld [vmem:[%s2077_s1 + $0x18] sm:$0xff]  ;;  %vm946_vm3 = vcmask 64512   ;;  %p2331_p12 = scmp.ne.s32.totalorder %s2322_s29, 0 }
  0x5c   : > { %s2342_s16 = smov (!%p541_p13, %s1492_s16), 3  ;;  %1588 = vmatpush3.msra.mxu1 %v580_v1  ;;  %1606 = vmatpush3.msra.mxu0 %v751_v8  ;;  %v1512_v22 = vld [vmem:[%s2077_s1 + $0x10] sm:$0xff]  ;;  %v1508_v53 = vld [vmem:[%s2302_s7] ss:$0 sm:$0xff]  ;;  %v1527_v59 = vld [vmem:[%s2085_s27 + $0x38] sm:$0xff]  ;;  %s1491_s1 = sshll.u32 %s2073_s25, 4 }
  0x5d   : > { %s1548_s28 = sshll.u32 %s2342_s16, 5  ;;  %1589 = vmatprep.subr.mxu1 %v1858_v0  ;;  %1607 = vmatprep.subr.mxu0 %v1858_v0  ;;  %s2132_s15 = scalar_lea.vmem %s2297_s2, %s2342_s16  ;;  %v1509_v55 = vld [vmem:[%s2303_s8] ss:$0 sm:$0xff]  ;;  %v1526_v61 = vld [vmem:[%s2085_s27 + $0x30] sm:$0xff]  ;;  %v1525_v62 = vld [vmem:[%s2085_s27 + $0x28] sm:$0xff] }
  0x5e   : > { %s2106_s30 = scalar_lea.vmem %s2298_s3, %s1548_s28  ;;  %1590 = vmatpush3.msra.mxu1 %v579_v2  ;;  %v1502_v9 = vld [vmem:[%s2132_s15] ss:$0 sm:$0xff]  ;;  %1608 = vmatpush3.msra.mxu0 %v750_v13  ;;  %s2148_s26 = scalar_lea.vmem %s2299_s4, %s2342_s16  ;;  %v1515_v31 = vld [vmem:[%s2132_s15 + $0x1] ss:$0 sm:$0xff] }
  0x5f   : > { %v665_v4 = vld [vmem:[%s2106_s30 + $0x18] sm:$0xff]  ;;  %1592 = vmatmul.mubr.msk.f32.vlgmr.msra.gmra.mxu1 %vm588_vm1, %v578_v3  ;;  %1594 = vmatprep.subr.mxu1 %v1858_v0  ;;  %v664_v5 = vld [vmem:[%s2106_s30 + $0x10] sm:$0xff]  ;;  %v663_v6 = vld [vmem:[%s2106_s30 + $0x8] sm:$0xff]  ;;  %s2173_s22 = scalar_lea.vmem %s2301_s6, %s2342_s16  ;;  %s2190_s24 = scalar_lea.vmem %s2304_s9, %s1548_s28 }
  0x60   : > { %1595 = vmatpush3.msra.mxu1 %v665_v4  ;;  %1602 = vmatprep.mubr.msk.f32.mxu1 %vm1859_vm0, %v1858_v0  ;;  %v662_v7 = vld [vmem:[%s2106_s30] sm:$0xff]  ;;  %v1520_v23 = vld [vmem:[%s2106_s30 + $0x38] sm:$0xff]  ;;  %v1519_v24 = vld [vmem:[%s2106_s30 + $0x30] sm:$0xff]  ;;  %s2226_s14 = scalar_lea.vmem [#allocation7], %s1491_s1 }
  0x61   : > { %1596 = vmatprep.subr.mxu1 %v1858_v0  ;;  %1609 = vmatprep.subr.mxu0 %v1858_v0  ;;  %v1504_v16 = vld [vmem:[%s2148_s26] ss:$0 sm:$0xff]  ;;  %v1518_v25 = vld [vmem:[%s2106_s30 + $0x28] sm:$0xff]  ;;  %v865_v43 = vld [vmem:[%s2190_s24 + $0x18] sm:$0xff] }
  0x62   : > { %1597 = vmatpush3.msra.mxu1 %v664_v5  ;;  %1610 = vmatpush3.msra.mxu0 %v749_v14  ;;  %v1517_v26 = vld [vmem:[%s2106_s30 + $0x20] sm:$0xff]  ;;  %v864_v44 = vld [vmem:[%s2190_s24 + $0x10] sm:$0xff]  ;;  %v863_v45 = vld [vmem:[%s2190_s24 + $0x8] sm:$0xff] }
  0x63   : > { %1598 = vmatprep.subr.mxu1 %v1858_v0  ;;  %1611 = vmatprep.subr.mxu0 %v1858_v0  ;;  %v1506_v27 = vld [vmem:[%s2173_s22] ss:$0 sm:$0xff]  ;;  %v1522_v57 = vld [vmem:[%s2148_s26 + $0x1] ss:$0 sm:$0xff]  ;;  %s2222_s26 = scalar_lea.vmem %s2305_s10, %s2342_s16  ;;  %s1550_s16 = sshll.u32 %s1944_s21, 8 }
  0x64   : > { %1599 = vmatpush3.msra.mxu1 %v663_v6  ;;  %1612 = vmatpush3.msra.mxu0 %v748_v15  ;;  %v862_v46 = vld [vmem:[%s2190_s24] sm:$0xff]  ;;  %s2250_s12 = scalar_lea.hbm %s2306_s11, %s1550_s16  ;;  %s1860_s21 = smov [#allocation7]  }
  0x65   : > { %1600 = vmatprep.subr.mxu1 %v1858_v0  ;;  %1627 = vmatprep.subr.mxu0 %v1858_v0  ;;  %v1524_v1 = vld [vmem:[%s2085_s27 + $0x20] sm:$0xff]  ;;  %s1321_s27 = sshll.u32 %s2226_s14, 4  ;;  %s1788_s19 = sshll.u32 %s1860_s21, 4  ;;  %s2245_s27 = int_to_ptr.vmem [resolvable:$true] %s1321_s27  ;;  %s1789_s19 = int_to_ptr.vmem [resolvable:$false] %s1788_s19 }
  0x66   : > { %1601 = vmatpush3.msra.mxu1 %v662_v7  ;;  %v1510_v2 = vld [vmem:[%s2222_s26] ss:$0 sm:$0xff]  ;;  %v1529_v6 = vld [vmem:[%s2173_s22 + $0x1] ss:$0 sm:$0xff]  ;;  %s1784_s28 = scalar_lea.vmem %s2245_s27, 256  ;;  %s1790_s23 = scalar_lea.vmem %s1789_s19, 512 }
  0x67   : > { %1616 = vmatprep.subr.mxu1 %v1858_v0  ;;  %p1785_p1 = scmp.ne.s32.totalorder %s2245_s27, %s1784_s28  ;;  %p1791_p0 = scmp.lt.s32.totalorder %s2245_s27, %s1789_s19 }
  0x68   : > { %p1792_p2 = scmp.lt.s32.totalorder %s1790_s23, %s1784_s28 }
  0x69   : > { %p1786_p7 = pnand %p1785_p1, %p2331_p12 }
  0x6a   : > { %p1793_p4 = por %p1792_p2, %p1791_p0 }
  0x6b   : > { %p1787_p10 = pneg %p1786_p7 }
  0x6d   : > { %p1794_p9 = pnand %p1793_p4, %p1787_p10 }
 0x11f   : > { %v658_v10 = vpop.f32.mrf.mxu1 }
 0x120   : > { %v659_v11 = vadd.f32 %v1502_v9, %v658_v10 }
 0x121   : > { %v1593_v12 = vpop.f32.mrf.mxu1 }
 0x122   : > { %1603 = vmatmul.mubr.msk.f32.vlgmr.msra.gmra.mxu1 %vm673_vm2, %v659_v11 }
 0x123   : > { %1624 = vmatprep.mubr.msk.f32.mxu1 %vm1859_vm0, %v1858_v0  ;;  %1617 = vmatpush3.msra.mxu1 %v865_v43 }
 0x124   : > { %1618 = vmatprep.subr.mxu1 %v1858_v0 }
 0x125   : > { %1619 = vmatpush3.msra.mxu1 %v864_v44 }
 0x126   : > { %1620 = vmatprep.subr.mxu1 %v1858_v0 }
 0x127   : > { %1621 = vmatpush3.msra.mxu1 %v863_v45 }
 0x128   : > { %1622 = vmatprep.subr.mxu1 %v1858_v0 }
 0x129   : > { %1623 = vmatpush3.msra.mxu1 %v862_v46 }
 0x12a   : > { %1645 = vmatprep.subr.mxu1 %v1858_v0 }
 0x1e2   : > { %v743_v17 = vpop.f32.mrf.mxu1 }
 0x1e3   : > { %v744_v18 = vadd.f32 %v1504_v16, %v743_v17 }
 0x1e4   : > { %v1604_v19 = vpop.f32.mrf.mxu1 }
 0x1e5   : > { %v747_v20 = vmax.f32 %v744_v18, 0.0  ;;  %v1534_v18 = vld [vmem:[%s2190_s24 + $0x38] sm:$0xff]  ;;  %v1533_v19 = vld [vmem:[%s2190_s24 + $0x30] sm:$0xff] }
 0x1e7   : > { %1614 = vmatmul.mubr.msk.f32.vlgmr.msra.gmra.mxu0 %vm673_vm2, %v747_v20  ;;  %v1532_v20 = vld [vmem:[%s2190_s24 + $0x28] sm:$0xff] }
 0x1e8   : > { %1628 = vmatpush3.msra.mxu0 %v1513_v21  ;;  %1631 = vmatprep.mubr.msk.f32.mxu0 %vm1859_vm0, %v1858_v0  ;;  %v1531_v21 = vld [vmem:[%s2190_s24 + $0x20] sm:$0xff]  ;;  %s1308_s24 = scalar_lea.sflag [#allocation4], %s2073_s25 }
 0x1e9   : > { %1629 = vmatprep.subr.mxu0 %v1858_v0 }
 0x1ea   : > { %1630 = vmatpush3.msra.mxu0 %v1512_v22 }
 0x1eb   : > { %1632 = vmatmul.mubr.msk.f32.vlgmr.msra.gmra.mxu0 %vm588_vm1, %v578_v3  ;;  %1634 = vmatprep.subr.mxu0 %v1858_v0 }
 0x1ec   : > { %1642 = vmatprep.mubr.msk.f32.mxu0 %vm1859_vm0, %v1858_v0  ;;  %1635 = vmatpush3.msra.mxu0 %v1520_v23 }
 0x1ed   : > { %1636 = vmatprep.subr.mxu0 %v1858_v0 }
 0x1ee   : > { %1637 = vmatpush3.msra.mxu0 %v1519_v24 }
 0x1ef   : > { %1638 = vmatprep.subr.mxu0 %v1858_v0 }
 0x1f0   : > { %1639 = vmatpush3.msra.mxu0 %v1518_v25 }
 0x1f1   : > { %1640 = vmatprep.subr.mxu0 %v1858_v0 }
 0x1f2   : > { %1641 = vmatpush3.msra.mxu0 %v1517_v26 }
 0x1f3   : > { %1656 = vmatprep.subr.mxu0 %v1858_v0 }
 0x2a7   : > { %v828_v28 = vpop.f32.mrf.mxu0 }
 0x2a8   : > { %v829_v29 = vadd.f32 %v1506_v27, %v828_v28 }
 0x2a9   : > { %v1615_v30 = vpop.f32.mrf.mxu0 }
 0x2aa   : > { %v832_v32 = vmax.f32 %v829_v29, 0.0  ;;  %v1536_v29 = vld [vmem:[%s2222_s26 + $0x1] ss:$0 sm:$0xff] }
 0x2ab   : > { %v1025_v33 = vpop.f32.mrf.mxu0 }
 0x2ac   : > { %v833_v34 = vadd.f32 %v832_v32, %v659_v11  ;;  %v2177_v35 = vadd.f32 %v1515_v31, %v1025_v33 }
 0x2ad   : > { %v1633_v36 = vpop.f32.mrf.mxu0 }
 0x2ae   : > { %v834_v37 = vsel %vm673_vm2, %v833_v34, 0.0  ;;  %1643 = vmatmul.mubr.msk.f32.vlgmr.msra.gmra.mxu0 %vm673_vm2, %v2177_v35 }
 0x2af   : > { %835 = vadd.xlane.f32.xlu0 %v834_v37  ;;  %1664 = vmatprep.mubr.msk.f32.mxu0 %vm1859_vm0, %v1858_v0 }
 0x2b0   : > { %1657 = vmatpush3.msra.mxu0 %v1534_v18 }
 0x2b1   : > { %1658 = vmatprep.subr.mxu0 %v1858_v0 }
 0x2b2   : > { %1659 = vmatpush3.msra.mxu0 %v1533_v19 }
 0x2b3   : > { %1660 = vmatprep.subr.mxu0 %v1858_v0 }
 0x2b4   : > { %1661 = vmatpush3.msra.mxu0 %v1532_v20 }
 0x2b5   : > { %1662 = vmatprep.subr.mxu0 %v1858_v0 }
 0x2b6   : > { %1663 = vmatpush3.msra.mxu0 %v1531_v21 }
 0x338   : > { %v836_v38 = vpop.xlane.xlu0 %835 }
 0x339   : > { %v838_v39 = vmul.f32 0.03125, %v836_v38 }
 0x33b   : > { %v839_v40 = vsub.f32 %v833_v34, %v838_v39 }
 0x33d   : > { %v840_v41 = vmul.f32 %v839_v40, %v839_v40 }
 0x33f   : > { %v841_v42 = vsel %vm673_vm2, %v840_v41, 0.0 }
 0x340   : > { %842 = vadd.xlane.f32.xlu0 %v841_v42 }
 0x36e   : > { %v1111_v47 = vpop.f32.mrf.mxu0 }
 0x36f   : > { %v1112_v60 = vadd.f32 %v1522_v57, %v1111_v47 }
 0x370   : > { %v1644_v48 = vpop.f32.mrf.mxu0 }
 0x371   : > { %v1115_v63 = vmax.f32 %v1112_v60, 0.0 }
 0x3c9   : > { %v843_v49 = vpop.xlane.xlu0 %842 }
 0x3ca   : > { %v844_v50 = vmul.f32 0.03125, %v843_v49 }
 0x3cc   : > { %v845_v51 = vadd.f32 1e-05, %v844_v50 }
 0x3ce   : > { %1724 = vrsqrt.f32 %v845_v51 }
 0x3db   : > { %v1725_v52 = vpop.eup %1724 }
 0x3dc   : > { %v847_v54 = vmul.f32 %v1725_v52, %v839_v40 }
 0x3de   : > { %v854_v56 = vmul.f32 %v1508_v53, %v847_v54 }
 0x3e0   : > { %v861_v58 = vadd.f32 %v1509_v55, %v854_v56 }
 0x3e2   : > { %1625 = vmatmul.mubr.msk.f32.vlgmr.msra.gmra.mxu1 %vm673_vm2, %v861_v58 }
 0x3e3   : > { %1646 = vmatpush3.msra.mxu1 %v1527_v59  ;;  %1653 = vmatprep.mubr.msk.f32.mxu1 %vm1859_vm0, %v1858_v0 }
 0x3e4   : > { %1647 = vmatprep.subr.mxu1 %v1858_v0 }
 0x3e5   : > { %1648 = vmatpush3.msra.mxu1 %v1526_v61 }
 0x3e6   : > { %1649 = vmatprep.subr.mxu1 %v1858_v0 }
 0x3e7   : > { %1650 = vmatpush3.msra.mxu1 %v1525_v62 }
 0x3e8   : > { %1651 = vmatprep.subr.mxu1 %v1858_v0 }
 0x3e9   : > { %1652 = vmatpush3.msra.mxu1 %v1524_v1 }
 0x3ea   : > { %1654 = vmatmul.mubr.msk.f32.vlgmr.msra.gmra.mxu1 %vm673_vm2, %v1115_v63 }
 0x4a2   : > { %v942_v3 = vpop.f32.mrf.mxu1 }
 0x4a3   : > { %v943_v4 = vadd.f32 %v1510_v2, %v942_v3 }
 0x4a4   : > { %v1626_v5 = vpop.f32.mrf.mxu1 }
 0x4a5   : > { %947 = vst.msk [vmem:[%s2226_s14] sm:$0xff] %vm946_vm3, %v943_v4 }
 0x4aa   : > { %v1198_v7 = vpop.f32.mrf.mxu1 }
 0x4ab   : > { %v1199_v8 = vadd.f32 %v1529_v6, %v1198_v7 }
 0x4ac   : > { %v1655_v9 = vpop.f32.mrf.mxu1 }
 0x4ad   : > { %v1202_v10 = vmax.f32 %v1199_v8, 0.0 }
 0x4af   : > { %v1203_v11 = vadd.f32 %v1202_v10, %v2177_v35 }
 0x4b1   : > { %v1204_v12 = vsel %vm673_vm2, %v1203_v11, 0.0 }
 0x4b2   : > { %1205 = vadd.xlane.f32.xlu1 %v1204_v12 }
 0x53b   : > { %v1206_v13 = vpop.xlane.xlu1 %1205 }
 0x53c   : > { %v1207_v14 = vmul.f32 0.03125, %v1206_v13 }
 0x53e   : > { %v1208_v15 = vsub.f32 %v1203_v11, %v1207_v14 }
 0x540   : > { %v1209_v16 = vmul.f32 %v1208_v15, %v1208_v15 }
 0x542   : > { %v1210_v17 = vsel %vm673_vm2, %v1209_v16, 0.0 }
 0x543   : > { %1211 = vadd.xlane.f32.xlu1 %v1210_v17 }
 0x5cc   : > { %v1212_v22 = vpop.xlane.xlu1 %1211 }
 0x5cd   : > { %v1213_v23 = vmul.f32 0.03125, %v1212_v22 }
 0x5cf   : > { %v1214_v24 = vadd.f32 1e-05, %v1213_v23 }
 0x5d1   : > { %1726 = vrsqrt.f32 %v1214_v24 }
 0x5de   : > { %v1727_v25 = vpop.eup %1726 }
 0x5df   : > { %v1216_v26 = vmul.f32 %v1727_v25, %v1208_v15 }
 0x5e1   : > { %v1217_v27 = vmul.f32 %v1508_v53, %v1216_v26 }
 0x5e3   : > { %v1218_v28 = vadd.f32 %v1509_v55, %v1217_v27 }
 0x5e5   : > { %1665 = vmatmul.mubr.msk.f32.vlgmr.msra.gmra.mxu0 %vm673_vm2, %v1218_v28 }
 0x6a5   : > { %v1301_v0 = vpop.f32.mrf.mxu0 }
 0x6a6   : > { %v1302_v30 = vadd.f32 %v1536_v29, %v1301_v0 }
 0x6a7   : > { %v1666_v31 = vpop.f32.mrf.mxu0 }
 0x6a8   : > { %1538 = vst.msk [vmem:[%s2226_s14 + $0x8] sm:$0xff] %vm946_vm3, %v1302_v30 }
 0x6a9   : > { %1797 = shalt.err (!%p1794_p9)
}
 0x6aa   : > { %s1798_s15 = scalar_lea.hbm %s2250_s12, 256  ;;  %s1802_s26 = scalar_lea.hbm %s2306_s11, 512 }
 0x6ab   : > { %p1799_p11 = scmp.ne.s32.totalorder %s2250_s12, %s1798_s15  ;;  %p1803_p8 = scmp.lt.s32.totalorder %s2250_s12, %s2306_s11 }
 0x6ac   : > { %p1804_p6 = scmp.lt.s32.totalorder %s1802_s26, %s1798_s15 }
 0x6ad   : > { %p1800_p3 = pnand %p1799_p11, %p2331_p12 }
 0x6ae   : > { %p1805_p13 = por %p1804_p6, %p1803_p8 }
 0x6af   : > { %p1801_p5 = pneg %p1800_p3 }
 0x6b1   : > { %p1806_p1 = pnand %p1805_p13, %p1801_p5 }
 0x6b3   : > { %1809 = shalt.err (!%p1806_p1)
}
 0x6b4   : > { %s1861_s16 = smov 128   ;;  %s1862_s22 = smov 8  }
 0x6b5   : > { %1671 = dma.vmem_to_hbm [thread:$0]  (%p2331_p12), %s2245_s27, 256, %s2250_s12, %s1308_s24, %s1861_s16, %s1861_s16, %s1862_s22  }
 0x6b6 PF: > { %s2332_s30 = sld [smem:[#allocation11_spill]]  ;;  %p2335_p10 = scmp.ge.s32.totalorder %s1852_s20, 2 }
 0x6b7   : > { %s2333_s28 = sld [smem:[#allocation15_spill]] }
 0x6bc   : > { %s1336_s21 = sand.u32 1, %s2332_s30  }
 0x6bd   : > { %p2334_p7 = scmp.ne.s32.totalorder %s2333_s28, 0  ;;  %s1337_s19 = scalar_lea.sflag [#allocation4], %s1336_s21 }
 0x6bf   : > { %p1681_p0 = pnand %p2335_p10, %p2334_p7 }
 0x6c1   : > { %p1682_p2 = pneg %p1681_p0 }
 0x6c3   : > { %1835 = dma.done.wait (%p1682_p2), %s1337_s19, 256  }
 0x6c4   : > { %1837 = vsyncadd (%p1682_p2), %s1337_s19, 4294967040  ;;  %s2336_s20 = sld [smem:[#allocation13_spill]]  ;;  %s2339_s17 = smov %s1844_s18 }
 0x6c5   : > { %s2337_s23 = sld [smem:[#allocation12_spill]] }
 0x6c6   : > { %s2338_s19 = sld [smem:[#allocation14_spill]] }
 0x6ca   : > { %p27_p4 = scmp.ge.s32.totalorder %s2336_s20, 4  }
 0x6cb   : > { %s2340_s18 = smov %s2337_s23 }
 0x6cc   :  { %29 = sbr.rel (!%p27_p4) target bundleno = 9 (0x9), region = 149 }
 0x6d1   :  { %1342 = vsyncpa [#allocation3], 1 }
 0x6d2   :  { %1344 = vsyncpa [#allocation3 + $0x1], 1 }
 0x6d3   :  { %1345 = vsyncpa [#allocation6], 1 }
 0x6d4   :  { %1347 = vsyncpa [#allocation6 + $0x1], 1 }
 0x6d5   :  { %1348 = vsyncpa [#allocation4], 1 }
 0x6d6   :  { %1350 = vsyncpa [#allocation4 + $0x1], 1 }

</bundles_post_ra>
